<compile_context>
chip_gen: v7x
topology: tpu7x:2x2x1
jax: 0.10.0
libtpu: 0.0.40
codegen_flags: <defaults>
</compile_context>

<pallas_src>
import jax
import jax.numpy as jnp
import numpy as np
from jax.experimental import pallas as pl
from jax.experimental.pallas import tpu as pltpu

D_IN = 16
D_HIDDEN = 32
N_BLOCKS = 5
N_ROWS = 256        # total number of input rows (small test shape)
GRID_STEPS = 2      # keep >= 2 so the v7x megacore can split the row grid


def _pack_factor():
    """Rows packed per lane-row: 8 (=> 256-wide layers) on v6e/v7x, else 4."""
    try:
        kind = jax.devices()[0].device_kind.lower()
    except Exception:
        return 4
    return 8 if ("v6" in kind or "v7" in kind) else 4


# ---------------------------------------------------------------------------
# Kernel
# ---------------------------------------------------------------------------
def _visnet_kernel(x_ref, w_in_ref, b_in_ref,
                   w0_ref, b0_ref, w1_ref, b1_ref,
                   w_out_ref, b_out_ref, o_ref):
    bf16 = jnp.bfloat16
    x = x_ref[...]                                    # (TM_p, P*D_IN), bf16

    # lin_in  (block-diagonal => all P packed rows processed at once)
    h = jnp.dot(x, w_in_ref[...],
                preferred_element_type=jnp.float32) + b_in_ref[...]

    # FCResBlocks (size_in == size_out == D_HIDDEN -> identity shortcut)
    for i in range(N_BLOCKS):                         # static unroll, 5 blocks
        a0 = jnp.maximum(h, 0.0).astype(bf16)         # ReLU (beta=0)
        net = jnp.dot(a0, w0_ref[i],
                      preferred_element_type=jnp.float32) + b0_ref[i]
        a1 = jnp.maximum(net, 0.0).astype(bf16)
        h = h + (jnp.dot(a1, w1_ref[i],
                         preferred_element_type=jnp.float32) + b1_ref[i])

    # lin_out(relu(h)) folded into a block-diagonal (P*H, P) reduction matrix:
    # one fully-packed-K matmul producing P scalars per packed row.
    a = jnp.maximum(h, 0.0)                           # f32
    out = jnp.dot(a, w_out_ref[...],
                  preferred_element_type=jnp.float32) + b_out_ref[...]
    o_ref[...] = out.astype(o_ref.dtype)              # (TM_p, P)


# ---------------------------------------------------------------------------
# Host-side packing (block-diagonal weight expansion, lane-packed x)
# ---------------------------------------------------------------------------
def pack_params(params, p):
    """Expand (in,out) weights to block-diagonal kron(I_p, W); tile biases."""
    (w_in, b_in, w0, b0, w1, b1, w_out, b_out) = params
    bf16 = jnp.bfloat16
    eye = jnp.eye(p, dtype=jnp.float32)
    bd = lambda w: jnp.kron(eye, w)                   # (a,b) -> (p*a, p*b)

    w_in_bd = bd(w_in).astype(bf16)                   # (p*D_IN, p*H)
    b_in_t = jnp.tile(b_in, (1, p))                   # (1, p*H) f32

    w0_bd = jnp.stack([bd(w0[i]) for i in range(N_BLOCKS)]).astype(bf16)
    w1_bd = jnp.stack([bd(w1[i]) for i in range(N_BLOCKS)]).astype(bf16)
    b0_t = jnp.tile(b0, (1, 1, p))                    # (B, 1, p*H) f32
    b1_t = jnp.tile(b1, (1, 1, p))

    w_out_bd = bd(w_out)                              # (p*H, p) f32 (tiny)
    b_out_t = jnp.tile(b_out, (1, p))                 # (1, p) f32
    return (w_in_bd, b_in_t, w0_bd, b0_t, w1_bd, b1_t, w_out_bd, b_out_t)


def pack_x(x, p):
    n, d = x.shape
    # packed row g, lanes [k*d, (k+1)*d) == original row g*p + k
    return x.reshape(n // p, p * d).astype(jnp.bfloat16)


# ---------------------------------------------------------------------------
# Wrapper
# ---------------------------------------------------------------------------
def visibility_net_pallas(x, params, *, pack=None, grid_steps=GRID_STEPS):
    p = _pack_factor() if pack is None else pack
    n, d_in = x.shape
    assert d_in == D_IN
    assert n % p == 0
    n_p = n // p                                      # packed rows
    assert n_p % grid_steps == 0
    tm_p = n_p // grid_steps                          # packed rows per tile
    assert tm_p % 8 == 0, "packed row tile must be a multiple of 8 sublanes"
    # NOTE: for large production N, cap tm_p at ~512 packed rows per step
    # (few MiB of VMEM) and grow grid_steps instead.

    xp = pack_x(x, p)
    (w_in, b_in, w0, b0, w1, b1, w_out, b_out) = pack_params(params, p)

    full = lambda a: pl.BlockSpec(a.shape, lambda i, nd=a.ndim: (0,) * nd)

    out = pl.pallas_call(
        _visnet_kernel,
        out_shape=jax.ShapeDtypeStruct((n_p, p), jnp.float32),
        grid_spec=pltpu.PrefetchScalarGridSpec(
            num_scalar_prefetch=0,
            grid=(grid_steps,),
            in_specs=[
                pl.BlockSpec((tm_p, p * D_IN), lambda i: (i, 0)),   # x tile
                full(w_in), full(b_in),
                full(w0), full(b0), full(w1), full(b1),
                full(w_out), full(b_out),
            ],
            out_specs=pl.BlockSpec((tm_p, p), lambda i: (i, 0)),
        ),
        compiler_params=pltpu.CompilerParams(
            dimension_semantics=("parallel",)),       # shard rows across TCs
    )(xp, w_in, b_in, w0, b0, w1, b1, w_out, b_out)

    return out.reshape(n, 1)                          # back to (N, 1)


# ---------------------------------------------------------------------------
# Parameters & reference
# ---------------------------------------------------------------------------
def make_params(key):
    """Deterministic synthetic parameters matching the PyTorch module's shapes.

    nn.Linear(d_in, d_out) has weight (d_out, d_in); we store the transpose
    (d_in, d_out) so layers are x @ W.  fc_1 gets a small nonzero init
    (the PyTorch module zero-inits it, which would make every dx == 0 and the
    residual path untestable) — a harness choice, not a semantics change.
    """
    ks = jax.random.split(key, 4 + 4 * N_BLOCKS)
    it = iter(ks)

    def kaiming(k, fan_in, shape):
        return jax.random.normal(k, shape, jnp.float32) * np.sqrt(2.0 / fan_in)

    w_in = kaiming(next(it), D_IN, (D_IN, D_HIDDEN))
    b_in = jnp.zeros((1, D_HIDDEN), jnp.float32)

    w0 = jnp.stack([kaiming(next(it), D_HIDDEN, (D_HIDDEN, D_HIDDEN))
                    for _ in range(N_BLOCKS)])
    b0 = jnp.zeros((N_BLOCKS, 1, D_HIDDEN), jnp.float32)
    w1 = jnp.stack([kaiming(next(it), D_HIDDEN, (D_HIDDEN, D_HIDDEN)) * 0.1
                    for _ in range(N_BLOCKS)])
    b1 = jnp.zeros((N_BLOCKS, 1, D_HIDDEN), jnp.float32)

    w_out = kaiming(next(it), D_HIDDEN, (D_HIDDEN, 1))
    b_out = jnp.zeros((1, 1), jnp.float32)
    return (w_in, b_in, w0, b0, w1, b1, w_out, b_out)


def visibility_net_ref(x, params):
    """Pure-JAX reference of VisibilityNet.forward (beta=0 -> ReLU), unpacked.

    Mirrors the kernel's bf16 operand / f32 accumulate arithmetic.
    """
    (w_in, b_in, w0, b0, w1, b1, w_out, b_out) = params
    bf16, f32 = jnp.bfloat16, jnp.float32
    h = jnp.dot(x.astype(bf16), w_in.astype(bf16),
                preferred_element_type=f32) + b_in
    for i in range(N_BLOCKS):
        a0 = jnp.maximum(h, 0.0).astype(bf16)
        net = jnp.dot(a0, w0[i].astype(bf16), preferred_element_type=f32) + b0[i]
        a1 = jnp.maximum(net, 0.0).astype(bf16)
        h = h + (jnp.dot(a1, w1[i].astype(bf16), preferred_element_type=f32) + b1[i])
    a = jnp.maximum(h, 0.0)
    return jnp.dot(a, w_out, preferred_element_type=f32) + b_out


if __name__ == "__main__":
    key = jax.random.PRNGKey(0)
    kx, kp = jax.random.split(key)
    x = jax.random.normal(kx, (N_ROWS, D_IN), jnp.float32)
    params = make_params(kp)

    out = visibility_net_pallas(x, params)
    out = jax.block_until_ready(out)

    ref = visibility_net_ref(x, params)
    assert out.shape == (N_ROWS, 1)
    np.testing.assert_allclose(np.asarray(out), np.asarray(ref),
                               rtol=5e-3, atol=5e-3)

    print("KERNEL_OK")
</pallas_src>

<mosaic_0001>
module attributes {stable_mosaic.version = 11 : i64} {
  func.func @_visnet_kernel(%arg0: i32, %arg1: memref<32x64xbf16, #tpu.memory_space<vmem>>, %arg2: memref<64x128xbf16, #tpu.memory_space<vmem>>, %arg3: memref<1x128xf32, #tpu.memory_space<vmem>>, %arg4: memref<5x128x128xbf16, #tpu.memory_space<vmem>>, %arg5: memref<5x1x128xf32, #tpu.memory_space<vmem>>, %arg6: memref<5x128x128xbf16, #tpu.memory_space<vmem>>, %arg7: memref<5x1x128xf32, #tpu.memory_space<vmem>>, %arg8: memref<128x4xf32, #tpu.memory_space<vmem>>, %arg9: memref<1x4xf32, #tpu.memory_space<vmem>>, %arg10: memref<32x4xf32, #tpu.memory_space<vmem>>) attributes {dimension_semantics = [#tpu.dimension_semantics<parallel>], iteration_bounds = array<i64: 2>, scalar_prefetch = 0 : i64, scratch_operands = 0 : i64, tpu.core_type = #tpu.core_type<tc>, window_params = [{transform_indices = @transform_0, window_bounds = array<i64: 32, 64>}, {pipeline_mode = #tpu.pipeline_mode<synchronous>, transform_indices = @transform_1, window_bounds = array<i64: 64, 128>}, {pipeline_mode = #tpu.pipeline_mode<synchronous>, transform_indices = @transform_2, window_bounds = array<i64: 1, 128>}, {pipeline_mode = #tpu.pipeline_mode<synchronous>, transform_indices = @transform_3, window_bounds = array<i64: 5, 128, 128>}, {pipeline_mode = #tpu.pipeline_mode<synchronous>, transform_indices = @transform_4, window_bounds = array<i64: 5, 1, 128>}, {pipeline_mode = #tpu.pipeline_mode<synchronous>, transform_indices = @transform_5, window_bounds = array<i64: 5, 128, 128>}, {pipeline_mode = #tpu.pipeline_mode<synchronous>, transform_indices = @transform_6, window_bounds = array<i64: 5, 1, 128>}, {pipeline_mode = #tpu.pipeline_mode<synchronous>, transform_indices = @transform_7, window_bounds = array<i64: 128, 4>}, {pipeline_mode = #tpu.pipeline_mode<synchronous>, transform_indices = @transform_8, window_bounds = array<i64: 1, 4>}, {transform_indices = @transform_9, window_bounds = array<i64: 32, 4>}]} {
    %c0 = arith.constant 0 : index
    %c0_0 = arith.constant 0 : index
    %0 = vector.load %arg1[%c0, %c0_0] : memref<32x64xbf16, #tpu.memory_space<vmem>>, vector<32x64xbf16>
    %c0_1 = arith.constant 0 : index
    %c0_2 = arith.constant 0 : index
    %1 = vector.load %arg2[%c0_1, %c0_2] : memref<64x128xbf16, #tpu.memory_space<vmem>>, vector<64x128xbf16>
    %cst = arith.constant dense<0.000000e+00> : vector<32x128xf32>
    %2 = tpu.matmul %0, %1, %cst {dimension_numbers = #tpu.dot_dimension_numbers<[1], [0], [0], [1], [0, 0, 1, 1], [], []>} : vector<32x64xbf16>, vector<64x128xbf16>, vector<32x128xf32> -> vector<32x128xf32>
    %c0_3 = arith.constant 0 : index
    %c0_4 = arith.constant 0 : index
    %3 = vector.load %arg3[%c0_3, %c0_4] : memref<1x128xf32, #tpu.memory_space<vmem>>, vector<1x128xf32>
    %4 = vector.broadcast %3 : vector<1x128xf32> to vector<32x128xf32>
    %5 = arith.addf %2, %4 : vector<32x128xf32>
    %cst_5 = arith.constant 0.000000e+00 : f32
    %6 = vector.broadcast %cst_5 : f32 to vector<32x128xf32>
    %7 = arith.maximumf %5, %6 : vector<32x128xf32>
    %8 = arith.truncf %7 : vector<32x128xf32> to vector<32x128xbf16>
    %c0_6 = arith.constant 0 : index
    %c0_7 = arith.constant 0 : index
    %c0_8 = arith.constant 0 : index
    %9 = vector.load %arg4[%c0_6, %c0_7, %c0_8] : memref<5x128x128xbf16, #tpu.memory_space<vmem>>, vector<1x128x128xbf16>
    %10 = vector.shape_cast %9 : vector<1x128x128xbf16> to vector<128x128xbf16>
    %cst_9 = arith.constant dense<0.000000e+00> : vector<32x128xf32>
    %11 = tpu.matmul %8, %10, %cst_9 {dimension_numbers = #tpu.dot_dimension_numbers<[1], [0], [0], [1], [0, 0, 1, 1], [], []>} : vector<32x128xbf16>, vector<128x128xbf16>, vector<32x128xf32> -> vector<32x128xf32>
    %c0_10 = arith.constant 0 : index
    %c0_11 = arith.constant 0 : index
    %c0_12 = arith.constant 0 : index
    %12 = vector.load %arg5[%c0_10, %c0_11, %c0_12] : memref<5x1x128xf32, #tpu.memory_space<vmem>>, vector<1x1x128xf32>
    %13 = vector.shape_cast %12 : vector<1x1x128xf32> to vector<1x128xf32>
    %14 = vector.broadcast %13 : vector<1x128xf32> to vector<32x128xf32>
    %15 = arith.addf %11, %14 : vector<32x128xf32>
    %cst_13 = arith.constant 0.000000e+00 : f32
    %16 = vector.broadcast %cst_13 : f32 to vector<32x128xf32>
    %17 = arith.maximumf %15, %16 : vector<32x128xf32>
    %18 = arith.truncf %17 : vector<32x128xf32> to vector<32x128xbf16>
    %c0_14 = arith.constant 0 : index
    %c0_15 = arith.constant 0 : index
    %c0_16 = arith.constant 0 : index
    %19 = vector.load %arg6[%c0_14, %c0_15, %c0_16] : memref<5x128x128xbf16, #tpu.memory_space<vmem>>, vector<1x128x128xbf16>
    %20 = vector.shape_cast %19 : vector<1x128x128xbf16> to vector<128x128xbf16>
    %cst_17 = arith.constant dense<0.000000e+00> : vector<32x128xf32>
    %21 = tpu.matmul %18, %20, %cst_17 {dimension_numbers = #tpu.dot_dimension_numbers<[1], [0], [0], [1], [0, 0, 1, 1], [], []>} : vector<32x128xbf16>, vector<128x128xbf16>, vector<32x128xf32> -> vector<32x128xf32>
    %c0_18 = arith.constant 0 : index
    %c0_19 = arith.constant 0 : index
    %c0_20 = arith.constant 0 : index
    %22 = vector.load %arg7[%c0_18, %c0_19, %c0_20] : memref<5x1x128xf32, #tpu.memory_space<vmem>>, vector<1x1x128xf32>
    %23 = vector.shape_cast %22 : vector<1x1x128xf32> to vector<1x128xf32>
    %24 = vector.broadcast %23 : vector<1x128xf32> to vector<32x128xf32>
    %25 = arith.addf %21, %24 : vector<32x128xf32>
    %26 = arith.addf %5, %25 : vector<32x128xf32>
    %cst_21 = arith.constant 0.000000e+00 : f32
    %27 = vector.broadcast %cst_21 : f32 to vector<32x128xf32>
    %28 = arith.maximumf %26, %27 : vector<32x128xf32>
    %29 = arith.truncf %28 : vector<32x128xf32> to vector<32x128xbf16>
    %c1 = arith.constant 1 : index
    %c0_22 = arith.constant 0 : index
    %c0_23 = arith.constant 0 : index
    %30 = vector.load %arg4[%c1, %c0_22, %c0_23] : memref<5x128x128xbf16, #tpu.memory_space<vmem>>, vector<1x128x128xbf16>
    %31 = vector.shape_cast %30 : vector<1x128x128xbf16> to vector<128x128xbf16>
    %cst_24 = arith.constant dense<0.000000e+00> : vector<32x128xf32>
    %32 = tpu.matmul %29, %31, %cst_24 {dimension_numbers = #tpu.dot_dimension_numbers<[1], [0], [0], [1], [0, 0, 1, 1], [], []>} : vector<32x128xbf16>, vector<128x128xbf16>, vector<32x128xf32> -> vector<32x128xf32>
    %c1_25 = arith.constant 1 : index
    %c0_26 = arith.constant 0 : index
    %c0_27 = arith.constant 0 : index
    %33 = vector.load %arg5[%c1_25, %c0_26, %c0_27] : memref<5x1x128xf32, #tpu.memory_space<vmem>>, vector<1x1x128xf32>
    %34 = vector.shape_cast %33 : vector<1x1x128xf32> to vector<1x128xf32>
    %35 = vector.broadcast %34 : vector<1x128xf32> to vector<32x128xf32>
    %36 = arith.addf %32, %35 : vector<32x128xf32>
    %cst_28 = arith.constant 0.000000e+00 : f32
    %37 = vector.broadcast %cst_28 : f32 to vector<32x128xf32>
    %38 = arith.maximumf %36, %37 : vector<32x128xf32>
    %39 = arith.truncf %38 : vector<32x128xf32> to vector<32x128xbf16>
    %c1_29 = arith.constant 1 : index
    %c0_30 = arith.constant 0 : index
    %c0_31 = arith.constant 0 : index
    %40 = vector.load %arg6[%c1_29, %c0_30, %c0_31] : memref<5x128x128xbf16, #tpu.memory_space<vmem>>, vector<1x128x128xbf16>
    %41 = vector.shape_cast %40 : vector<1x128x128xbf16> to vector<128x128xbf16>
    %cst_32 = arith.constant dense<0.000000e+00> : vector<32x128xf32>
    %42 = tpu.matmul %39, %41, %cst_32 {dimension_numbers = #tpu.dot_dimension_numbers<[1], [0], [0], [1], [0, 0, 1, 1], [], []>} : vector<32x128xbf16>, vector<128x128xbf16>, vector<32x128xf32> -> vector<32x128xf32>
    %c1_33 = arith.constant 1 : index
    %c0_34 = arith.constant 0 : index
    %c0_35 = arith.constant 0 : index
    %43 = vector.load %arg7[%c1_33, %c0_34, %c0_35] : memref<5x1x128xf32, #tpu.memory_space<vmem>>, vector<1x1x128xf32>
    %44 = vector.shape_cast %43 : vector<1x1x128xf32> to vector<1x128xf32>
    %45 = vector.broadcast %44 : vector<1x128xf32> to vector<32x128xf32>
    %46 = arith.addf %42, %45 : vector<32x128xf32>
    %47 = arith.addf %26, %46 : vector<32x128xf32>
    %cst_36 = arith.constant 0.000000e+00 : f32
    %48 = vector.broadcast %cst_36 : f32 to vector<32x128xf32>
    %49 = arith.maximumf %47, %48 : vector<32x128xf32>
    %50 = arith.truncf %49 : vector<32x128xf32> to vector<32x128xbf16>
    %c2 = arith.constant 2 : index
    %c0_37 = arith.constant 0 : index
    %c0_38 = arith.constant 0 : index
    %51 = vector.load %arg4[%c2, %c0_37, %c0_38] : memref<5x128x128xbf16, #tpu.memory_space<vmem>>, vector<1x128x128xbf16>
    %52 = vector.shape_cast %51 : vector<1x128x128xbf16> to vector<128x128xbf16>
    %cst_39 = arith.constant dense<0.000000e+00> : vector<32x128xf32>
    %53 = tpu.matmul %50, %52, %cst_39 {dimension_numbers = #tpu.dot_dimension_numbers<[1], [0], [0], [1], [0, 0, 1, 1], [], []>} : vector<32x128xbf16>, vector<128x128xbf16>, vector<32x128xf32> -> vector<32x128xf32>
    %c2_40 = arith.constant 2 : index
    %c0_41 = arith.constant 0 : index
    %c0_42 = arith.constant 0 : index
    %54 = vector.load %arg5[%c2_40, %c0_41, %c0_42] : memref<5x1x128xf32, #tpu.memory_space<vmem>>, vector<1x1x128xf32>
    %55 = vector.shape_cast %54 : vector<1x1x128xf32> to vector<1x128xf32>
    %56 = vector.broadcast %55 : vector<1x128xf32> to vector<32x128xf32>
    %57 = arith.addf %53, %56 : vector<32x128xf32>
    %cst_43 = arith.constant 0.000000e+00 : f32
    %58 = vector.broadcast %cst_43 : f32 to vector<32x128xf32>
    %59 = arith.maximumf %57, %58 : vector<32x128xf32>
    %60 = arith.truncf %59 : vector<32x128xf32> to vector<32x128xbf16>
    %c2_44 = arith.constant 2 : index
    %c0_45 = arith.constant 0 : index
    %c0_46 = arith.constant 0 : index
    %61 = vector.load %arg6[%c2_44, %c0_45, %c0_46] : memref<5x128x128xbf16, #tpu.memory_space<vmem>>, vector<1x128x128xbf16>
    %62 = vector.shape_cast %61 : vector<1x128x128xbf16> to vector<128x128xbf16>
    %cst_47 = arith.constant dense<0.000000e+00> : vector<32x128xf32>
    %63 = tpu.matmul %60, %62, %cst_47 {dimension_numbers = #tpu.dot_dimension_numbers<[1], [0], [0], [1], [0, 0, 1, 1], [], []>} : vector<32x128xbf16>, vector<128x128xbf16>, vector<32x128xf32> -> vector<32x128xf32>
    %c2_48 = arith.constant 2 : index
    %c0_49 = arith.constant 0 : index
    %c0_50 = arith.constant 0 : index
    %64 = vector.load %arg7[%c2_48, %c0_49, %c0_50] : memref<5x1x128xf32, #tpu.memory_space<vmem>>, vector<1x1x128xf32>
    %65 = vector.shape_cast %64 : vector<1x1x128xf32> to vector<1x128xf32>
    %66 = vector.broadcast %65 : vector<1x128xf32> to vector<32x128xf32>
    %67 = arith.addf %63, %66 : vector<32x128xf32>
    %68 = arith.addf %47, %67 : vector<32x128xf32>
    %cst_51 = arith.constant 0.000000e+00 : f32
    %69 = vector.broadcast %cst_51 : f32 to vector<32x128xf32>
    %70 = arith.maximumf %68, %69 : vector<32x128xf32>
    %71 = arith.truncf %70 : vector<32x128xf32> to vector<32x128xbf16>
    %c3 = arith.constant 3 : index
    %c0_52 = arith.constant 0 : index
    %c0_53 = arith.constant 0 : index
    %72 = vector.load %arg4[%c3, %c0_52, %c0_53] : memref<5x128x128xbf16, #tpu.memory_space<vmem>>, vector<1x128x128xbf16>
    %73 = vector.shape_cast %72 : vector<1x128x128xbf16> to vector<128x128xbf16>
    %cst_54 = arith.constant dense<0.000000e+00> : vector<32x128xf32>
    %74 = tpu.matmul %71, %73, %cst_54 {dimension_numbers = #tpu.dot_dimension_numbers<[1], [0], [0], [1], [0, 0, 1, 1], [], []>} : vector<32x128xbf16>, vector<128x128xbf16>, vector<32x128xf32> -> vector<32x128xf32>
    %c3_55 = arith.constant 3 : index
    %c0_56 = arith.constant 0 : index
    %c0_57 = arith.constant 0 : index
    %75 = vector.load %arg5[%c3_55, %c0_56, %c0_57] : memref<5x1x128xf32, #tpu.memory_space<vmem>>, vector<1x1x128xf32>
    %76 = vector.shape_cast %75 : vector<1x1x128xf32> to vector<1x128xf32>
    %77 = vector.broadcast %76 : vector<1x128xf32> to vector<32x128xf32>
    %78 = arith.addf %74, %77 : vector<32x128xf32>
    %cst_58 = arith.constant 0.000000e+00 : f32
    %79 = vector.broadcast %cst_58 : f32 to vector<32x128xf32>
    %80 = arith.maximumf %78, %79 : vector<32x128xf32>
    %81 = arith.truncf %80 : vector<32x128xf32> to vector<32x128xbf16>
    %c3_59 = arith.constant 3 : index
    %c0_60 = arith.constant 0 : index
    %c0_61 = arith.constant 0 : index
    %82 = vector.load %arg6[%c3_59, %c0_60, %c0_61] : memref<5x128x128xbf16, #tpu.memory_space<vmem>>, vector<1x128x128xbf16>
    %83 = vector.shape_cast %82 : vector<1x128x128xbf16> to vector<128x128xbf16>
    %cst_62 = arith.constant dense<0.000000e+00> : vector<32x128xf32>
    %84 = tpu.matmul %81, %83, %cst_62 {dimension_numbers = #tpu.dot_dimension_numbers<[1], [0], [0], [1], [0, 0, 1, 1], [], []>} : vector<32x128xbf16>, vector<128x128xbf16>, vector<32x128xf32> -> vector<32x128xf32>
    %c3_63 = arith.constant 3 : index
    %c0_64 = arith.constant 0 : index
    %c0_65 = arith.constant 0 : index
    %85 = vector.load %arg7[%c3_63, %c0_64, %c0_65] : memref<5x1x128xf32, #tpu.memory_space<vmem>>, vector<1x1x128xf32>
    %86 = vector.shape_cast %85 : vector<1x1x128xf32> to vector<1x128xf32>
    %87 = vector.broadcast %86 : vector<1x128xf32> to vector<32x128xf32>
    %88 = arith.addf %84, %87 : vector<32x128xf32>
    %89 = arith.addf %68, %88 : vector<32x128xf32>
    %cst_66 = arith.constant 0.000000e+00 : f32
    %90 = vector.broadcast %cst_66 : f32 to vector<32x128xf32>
    %91 = arith.maximumf %89, %90 : vector<32x128xf32>
    %92 = arith.truncf %91 : vector<32x128xf32> to vector<32x128xbf16>
    %c4 = arith.constant 4 : index
    %c0_67 = arith.constant 0 : index
    %c0_68 = arith.constant 0 : index
    %93 = vector.load %arg4[%c4, %c0_67, %c0_68] : memref<5x128x128xbf16, #tpu.memory_space<vmem>>, vector<1x128x128xbf16>
    %94 = vector.shape_cast %93 : vector<1x128x128xbf16> to vector<128x128xbf16>
    %cst_69 = arith.constant dense<0.000000e+00> : vector<32x128xf32>
    %95 = tpu.matmul %92, %94, %cst_69 {dimension_numbers = #tpu.dot_dimension_numbers<[1], [0], [0], [1], [0, 0, 1, 1], [], []>} : vector<32x128xbf16>, vector<128x128xbf16>, vector<32x128xf32> -> vector<32x128xf32>
    %c4_70 = arith.constant 4 : index
    %c0_71 = arith.constant 0 : index
    %c0_72 = arith.constant 0 : index
    %96 = vector.load %arg5[%c4_70, %c0_71, %c0_72] : memref<5x1x128xf32, #tpu.memory_space<vmem>>, vector<1x1x128xf32>
    %97 = vector.shape_cast %96 : vector<1x1x128xf32> to vector<1x128xf32>
    %98 = vector.broadcast %97 : vector<1x128xf32> to vector<32x128xf32>
    %99 = arith.addf %95, %98 : vector<32x128xf32>
    %cst_73 = arith.constant 0.000000e+00 : f32
    %100 = vector.broadcast %cst_73 : f32 to vector<32x128xf32>
    %101 = arith.maximumf %99, %100 : vector<32x128xf32>
    %102 = arith.truncf %101 : vector<32x128xf32> to vector<32x128xbf16>
    %c4_74 = arith.constant 4 : index
    %c0_75 = arith.constant 0 : index
    %c0_76 = arith.constant 0 : index
    %103 = vector.load %arg6[%c4_74, %c0_75, %c0_76] : memref<5x128x128xbf16, #tpu.memory_space<vmem>>, vector<1x128x128xbf16>
    %104 = vector.shape_cast %103 : vector<1x128x128xbf16> to vector<128x128xbf16>
    %cst_77 = arith.constant dense<0.000000e+00> : vector<32x128xf32>
    %105 = tpu.matmul %102, %104, %cst_77 {dimension_numbers = #tpu.dot_dimension_numbers<[1], [0], [0], [1], [0, 0, 1, 1], [], []>} : vector<32x128xbf16>, vector<128x128xbf16>, vector<32x128xf32> -> vector<32x128xf32>
    %c4_78 = arith.constant 4 : index
    %c0_79 = arith.constant 0 : index
    %c0_80 = arith.constant 0 : index
    %106 = vector.load %arg7[%c4_78, %c0_79, %c0_80] : memref<5x1x128xf32, #tpu.memory_space<vmem>>, vector<1x1x128xf32>
    %107 = vector.shape_cast %106 : vector<1x1x128xf32> to vector<1x128xf32>
    %108 = vector.broadcast %107 : vector<1x128xf32> to vector<32x128xf32>
    %109 = arith.addf %105, %108 : vector<32x128xf32>
    %110 = arith.addf %89, %109 : vector<32x128xf32>
    %cst_81 = arith.constant 0.000000e+00 : f32
    %111 = vector.broadcast %cst_81 : f32 to vector<32x128xf32>
    %112 = arith.maximumf %110, %111 : vector<32x128xf32>
    %c0_82 = arith.constant 0 : index
    %c0_83 = arith.constant 0 : index
    %113 = vector.load %arg8[%c0_82, %c0_83] : memref<128x4xf32, #tpu.memory_space<vmem>>, vector<128x4xf32>
    %cst_84 = arith.constant dense<0.000000e+00> : vector<32x4xf32>
    %114 = tpu.matmul %112, %113, %cst_84 {dimension_numbers = #tpu.dot_dimension_numbers<[1], [0], [0], [1], [0, 0, 1, 1], [], []>} : vector<32x128xf32>, vector<128x4xf32>, vector<32x4xf32> -> vector<32x4xf32>
    %c0_85 = arith.constant 0 : index
    %c0_86 = arith.constant 0 : index
    %115 = vector.load %arg9[%c0_85, %c0_86] : memref<1x4xf32, #tpu.memory_space<vmem>>, vector<1x4xf32>
    %116 = vector.broadcast %115 : vector<1x4xf32> to vector<32x4xf32>
    %117 = arith.addf %114, %116 : vector<32x4xf32>
    %c0_87 = arith.constant 0 : index
    %c0_88 = arith.constant 0 : index
    %118 = vector.load %arg10[%c0_87, %c0_88] : memref<32x4xf32, #tpu.memory_space<vmem>>, vector<32x4xf32>
    tpu.vector_store %arg10[%c0_87, %c0_88], %117 {strides = array<i32>} : memref<32x4xf32, #tpu.memory_space<vmem>>, vector<32x4xf32>,
    return
  }
  func.func @transform_0(%arg0: i32) -> (i32, i32) {
    %c0_i32 = arith.constant 0 : i32
    %c0_i32_0 = arith.constant 0 : i32
    return %arg0, %c0_i32 : i32, i32
  }
  func.func @transform_1(%arg0: i32) -> (i32, i32) {
    %c0_i32 = arith.constant 0 : i32
    %c0_i32_0 = arith.constant 0 : i32
    %c0_i32_1 = arith.constant 0 : i32
    return %c0_i32, %c0_i32_0 : i32, i32
  }
  func.func @transform_2(%arg0: i32) -> (i32, i32) {
    %c0_i32 = arith.constant 0 : i32
    %c0_i32_0 = arith.constant 0 : i32
    %c0_i32_1 = arith.constant 0 : i32
    return %c0_i32, %c0_i32_0 : i32, i32
  }
  func.func @transform_3(%arg0: i32) -> (i32, i32, i32) {
    %c0_i32 = arith.constant 0 : i32
    %c0_i32_0 = arith.constant 0 : i32
    %c0_i32_1 = arith.constant 0 : i32
    %c0_i32_2 = arith.constant 0 : i32
    return %c0_i32, %c0_i32_0, %c0_i32_1 : i32, i32, i32
  }
  func.func @transform_4(%arg0: i32) -> (i32, i32, i32) {
    %c0_i32 = arith.constant 0 : i32
    %c0_i32_0 = arith.constant 0 : i32
    %c0_i32_1 = arith.constant 0 : i32
    %c0_i32_2 = arith.constant 0 : i32
    return %c0_i32, %c0_i32_0, %c0_i32_1 : i32, i32, i32
  }
  func.func @transform_5(%arg0: i32) -> (i32, i32, i32) {
    %c0_i32 = arith.constant 0 : i32
    %c0_i32_0 = arith.constant 0 : i32
    %c0_i32_1 = arith.constant 0 : i32
    %c0_i32_2 = arith.constant 0 : i32
    return %c0_i32, %c0_i32_0, %c0_i32_1 : i32, i32, i32
  }
  func.func @transform_6(%arg0: i32) -> (i32, i32, i32) {
    %c0_i32 = arith.constant 0 : i32
    %c0_i32_0 = arith.constant 0 : i32
    %c0_i32_1 = arith.constant 0 : i32
    %c0_i32_2 = arith.constant 0 : i32
    return %c0_i32, %c0_i32_0, %c0_i32_1 : i32, i32, i32
  }
  func.func @transform_7(%arg0: i32) -> (i32, i32) {
    %c0_i32 = arith.constant 0 : i32
    %c0_i32_0 = arith.constant 0 : i32
    %c0_i32_1 = arith.constant 0 : i32
    return %c0_i32, %c0_i32_0 : i32, i32
  }
  func.func @transform_8(%arg0: i32) -> (i32, i32) {
    %c0_i32 = arith.constant 0 : i32
    %c0_i32_0 = arith.constant 0 : i32
    %c0_i32_1 = arith.constant 0 : i32
    return %c0_i32, %c0_i32_0 : i32, i32
  }
  func.func @transform_9(%arg0: i32) -> (i32, i32) {
    %c0_i32 = arith.constant 0 : i32
    %c0_i32_0 = arith.constant 0 : i32
    return %arg0, %c0_i32 : i32, i32
  }
}

</mosaic_0001>

<bundles_post_ra>
// kernel: tpu_custom_call.1
= control target key start
LH: loop header
LB: loop body
LE: loop exit
PB: predicated region body
PF: predicated region fallthrough
CT: control target
= control target key end

     0   :  { %14 = vsyncpa [#allocation3], 0  ;;  %s3019_s0 = inlined_call_operand.vmem [shape: bf16[64,64], index: 0, kind: input, shape index: {}]   ;;  %s3020_s1 = inlined_call_operand.vmem [shape: bf16[64,128], index: 1, kind: input, shape index: {}]   ;;  %s3021_s2 = inlined_call_operand.vmem [shape: f32[1,128], index: 2, kind: input, shape index: {}]   ;;  %s3022_s3 = inlined_call_operand.hbm [shape: bf16[5,128,128], index: 3, kind: input, shape index: {}]   ;;  %s3023_s4 = inlined_call_operand.vmem [shape: f32[5,1,128], index: 4, kind: input, shape index: {}]   ;;  %s3024_s5 = inlined_call_operand.hbm [shape: bf16[5,128,128], index: 5, kind: input, shape index: {}]   ;;  %s3025_s6 = inlined_call_operand.vmem [shape: f32[5,1,128], index: 6, kind: input, shape index: {}]   ;;  %s3026_s7 = inlined_call_operand.vmem [shape: f32[128,4], index: 7, kind: input, shape index: {}]   ;;  %s3027_s8 = inlined_call_operand.vmem [shape: f32[1,4], index: 8, kind: input, shape index: {}]   ;;  %s3028_s9 = inlined_call_operand.vmem [shape: f32[64,4], index: 9, kind: output, shape index: {}]  }
   0x1   :  { %15 = vsyncpa [#allocation5], 0  ;;  %s2741_s30 = smov 0  }
   0x2 LB: > { %s1967_s10 = sadd.s32 4294967295, %s2685_s30   ;;  %p1969_p0 = scmp.ge.s32.totalorder %s2685_s30, 1  ;;  %s2685_s30 = sphi %s2741_s30, %s21_s30  }
   0x3   : > { %p246_p1 = scmp.lt.s32.totalorder %s2685_s30, 3  ;;  %s2687_s11 = smov [#allocation2]  }
   0x4   : > { %s264_s12 = sshll.u32 %s2687_s11, 4  ;;  %p2755_p3 = scmp.eq.s32.totalorder %s1967_s10, 0  ;;  %s265_s12 = int_to_ptr.vmem [resolvable:$true] %s264_s12 }
   0x5   : > { %p2749_p2 = pnand %p1969_p0, %p246_p1  ;;  %s2688_s15 = smov [#allocation4]  }
   0x6   : > { %s3033_s14 = scalar_select %p2755_p3, 1, 0 }
   0x7   : > { %s3032_s13 = scalar_select %p2749_p2, 1, 0 }
   0x8   : > { %p2506_p4 = pneg %p2749_p2  ;;  %s280_s16 = sshll.u32 %s2688_s15, 4  ;;  %s2767_s16 = int_to_ptr.vmem [resolvable:$true] %s280_s16 }
   0x9   : > { %s2615_s20 = scalar_lea.hbm %s3022_s3, 5120 }
   0xa   : > { %p2763_p5 = pnand %p2755_p3, %p2506_p4  ;;  %p2616_p6 = scmp.ne.s32.totalorder %s3022_s3, %s2615_s20 }
   0xb   : > { %p2622_p10 = scmp.lt.u32.totalorder %s2615_s20, %s3022_s3 }
   0xc   : > { %p2617_p7 = pneg %p2763_p5 }
   0xe   : > { %p2618_p8 = pnand %p2617_p7, %p2616_p6 }
  0x10   : > { %p2619_p9 = pneg %p2618_p8 }
  0x12   : > { %p2624_p11 = pnand %p2622_p10, %p2619_p9 }
  0x14   : > { %2627 = shalt.err (!%p2624_p11)
}
  0x15   : > { %s2628_s25 = scalar_lea.vmem %s265_s12, 5120  ;;  %p2636_p1 = scmp.lt.s32.totalorder %s265_s12, %s265_s12 }
  0x16   : > { %p2629_p12 = scmp.ne.s32.totalorder %s265_s12, %s2628_s25  ;;  %p2637_p4 = scmp.lt.s32.totalorder %s2628_s25, %s2628_s25 }
  0x18   : > { %p2631_p13 = pnand %p2629_p12, %p2617_p7  ;;  %p2638_p3 = por %p2637_p4, %p2636_p1 }
  0x1a   : > { %p2632_p0 = pneg %p2631_p13 }
  0x1c   : > { %p2639_p2 = pnand %p2638_p3, %p2632_p0 }
  0x1e   : > { %2642 = shalt.err (!%p2639_p2)
}
  0x1f   : > { %s2689_s26 = smov 64   ;;  %s2690_s27 = smov 4  }
  0x20   : > { %2509 = dma.hbm_to_vmem [thread:$0]  (!%p2763_p5), %s3022_s3, 5120, %s265_s12, [#allocation3], %s2689_s26, %s2689_s26, %s2690_s27  }
  0x21   : > { %s2643_s18 = scalar_lea.hbm %s3024_s5, 5120 }
  0x22   : > { %p2644_p6 = scmp.ne.s32.totalorder %s3024_s5, %s2643_s18  ;;  %p2650_p8 = scmp.lt.u32.totalorder %s2643_s18, %s3024_s5 }
  0x24   : > { %p2646_p2 = pnand %p2644_p6, %p2617_p7 }
  0x26   : > { %p2647_p3 = pneg %p2646_p2 }
  0x28   : > { %p2652_p9 = pnand %p2650_p8, %p2647_p3 }
  0x2a   : > { %2655 = shalt.err (!%p2652_p9)
}
  0x2b   : > { %s2656_s12 = scalar_lea.vmem %s2767_s16, 5120  ;;  %p2664_p13 = scmp.lt.s32.totalorder %s2767_s16, %s2767_s16 }
  0x2c   : > { %p2657_p10 = scmp.ne.s32.totalorder %s2767_s16, %s2656_s12  ;;  %p2665_p0 = scmp.lt.s32.totalorder %s2656_s12, %s2656_s12 }
  0x2e   : > { %p2659_p11 = pnand %p2657_p10, %p2617_p7  ;;  %p2666_p1 = por %p2665_p0, %p2664_p13 }
  0x30   : > { %p2660_p12 = pneg %p2659_p11 }
  0x32   : > { %p2667_p4 = pnand %p2666_p1, %p2660_p12 }
  0x34   : > { %2670 = shalt.err (!%p2667_p4)
}
  0x35   : > { %2512 = dma.hbm_to_vmem [thread:$0]  (!%p2763_p5), %s3024_s5, 5120, %s2767_s16, [#allocation5], %s2689_s26, %s2689_s26, %s2690_s27  }
  0x36   : > { %p3035_p6 = scmp.ne.s32.totalorder %s3032_s13, 0 }
  0x37   : > { %p3036_p2 = scmp.ne.s32.totalorder (!%p3035_p6), %s3033_s14, 0 }
  0x38   : > { %314 = sbr.rel (%p3035_p6) target bundleno = 2752 (0xac0), region = 56 }
  0x3f   : > { %2676 = dma.done.wait (%p3036_p2), [#allocation3], 5120  }
  0x40   : > { %2678 = vsyncadd (%p3036_p2), [#allocation3], 4294962176 }
  0x41   : > { %2680 = dma.done.wait (%p3036_p2), [#allocation5], 5120  }
  0x42   : > { %2682 = vsyncadd (%p3036_p2), [#allocation5], 4294962176  ;;  %s1976_s17 = sshll.u32 %s1967_s10, 2  ;;  %v2529_v0 = vld [vmem:[%s3020_s1] sm:$0xff]   ;;  %v2530_v1 = vld [vmem:[%s3020_s1 + $0x8] sm:$0xff]   ;;  %vm420_vm0 = vcmask 523264  }
  0x43   : > { %p355_p7 = scmp.lt.s32.totalorder %s1976_s17, 7  ;;  %2216 = vmatprep.subr.bf16.mxu0 %v2529_v0  ;;  %v2531_v2 = vld [vmem:[%s3020_s1 + $0x10] sm:$0xff]   ;;  %v2535_v4 = vld [vmem:[#allocation2] sm:$0xff]   ;;  %v2536_v5 = vld [vmem:[#allocation2 + $0x8] sm:$0xff]   ;;  %vm1884_vm1 = vcmask 31744  }
  0x44   : > { %2217 = vmatpush3.bf16.msra.mxu0 %v2529_v0  ;;  %v2532_v6 = vld [vmem:[%s3020_s1 + $0x18] sm:$0xff]   ;;  %2228 = vmatprep.subr.bf16.mxu1 %v2535_v4  ;;  %v2537_v7 = vld [vmem:[#allocation2 + $0x10] sm:$0xff]   ;;  %v2539_v10 = vld [vmem:[#allocation2 + $0x20] sm:$0xff]  }
  0x45   : > { %s3038_s17 = smov (!%p355_p7, %s1976_s17), 7  ;;  %2218 = vmatprep.subr.bf16.mxu0 %v2530_v1  ;;  %2229 = vmatpush3.bf16.msra.mxu1 %v2535_v4  ;;  %v2538_v9 = vld [vmem:[#allocation2 + $0x18] sm:$0xff]   ;;  %v2540_v11 = vld [vmem:[#allocation2 + $0x28] sm:$0xff]   ;;  %v2541_v12 = vld [vmem:[#allocation2 + $0x30] sm:$0xff]  }
  0x46   : > { %s1977_s13 = sshll.u32 %s3038_s17, 2  ;;  %2230 = vmatprep.subr.bf16.mxu1 %v2536_v5  ;;  %v2542_v13 = vld [vmem:[#allocation2 + $0x38] sm:$0xff]   ;;  %v2543_v14 = vld [vmem:[#allocation4] sm:$0xff]   ;;  %v2544_v15 = vld [vmem:[#allocation4 + $0x8] sm:$0xff]   ;;  %s1979_s11 = sshll.u32 %s3038_s17, 3 }
  0x47   : > { %s358_s14 = scalar_lea.vmem %s3019_s0, %s1977_s13  ;;  %v2545_v16 = vld [vmem:[#allocation4 + $0x10] sm:$0xff]   ;;  %v2546_v17 = vld [vmem:[#allocation4 + $0x18] sm:$0xff]   ;;  %v2547_v18 = vld [vmem:[#allocation4 + $0x20] sm:$0xff]   ;;  %s364_s21 = scalar_lea.vmem %s3028_s9, %s1979_s11 }
  0x48   : > { %v2533_v3 = vld [vmem:[%s358_s14] sm:$0xff]   ;;  %2219 = vmatpush3.bf16.msra.mxu0 %v2530_v1  ;;  %v2534_v8 = vld [vmem:[%s358_s14 + $0x8] sm:$0xff]   ;;  %v2549_v35 = vld [vmem:[#allocation4 + $0x30] sm:$0xff]  }
  0x49   : > { %2224 = vmatprep.mubr.msk.bf16.mxu0 %vm420_vm0, %v2533_v3  ;;  %2220 = vmatprep.subr.bf16.mxu0 %v2531_v2  ;;  %v2548_v19 = vld [vmem:[#allocation4 + $0x28] sm:$0xff]   ;;  %v1980_v20 = vld [vmem:[%s3021_s2] ss:$0 sm:$0xff]  ;;  %v2550_v36 = vld [vmem:[#allocation4 + $0x38] sm:$0xff]  }
  0x4a   : > { %2231 = vmatpush3.bf16.msra.mxu1 %v2536_v5  ;;  %v2551_v37 = vld [vmem:[#allocation2 + $0x40] sm:$0xff]   ;;  %v2552_v38 = vld [vmem:[#allocation2 + $0x48] sm:$0xff]   ;;  %v2553_v39 = vld [vmem:[#allocation2 + $0x50] sm:$0xff]  }
  0x4b   : > { %2232 = vmatprep.subr.bf16.mxu1 %v2537_v7  ;;  %v2554_v40 = vld [vmem:[#allocation2 + $0x58] sm:$0xff]   ;;  %v2555_v41 = vld [vmem:[#allocation2 + $0x60] sm:$0xff]   ;;  %v2556_v57 = vld [vmem:[#allocation2 + $0x68] sm:$0xff]  }
  0x4c   : > { %2221 = vmatpush3.bf16.msra.mxu0 %v2531_v2  ;;  %v1989_v42 = vld [vmem:[%s3023_s4] ss:$0 sm:$0xff]  ;;  %v2557_v58 = vld [vmem:[#allocation2 + $0x70] sm:$0xff]   ;;  %v2558_v59 = vld [vmem:[#allocation2 + $0x78] sm:$0xff]  }
  0x4d   : > { %2222 = vmatprep.subr.bf16.mxu0 %v2532_v6  ;;  %v2559_v60 = vld [vmem:[#allocation4 + $0x40] sm:$0xff]   ;;  %v2560_v61 = vld [vmem:[#allocation4 + $0x48] sm:$0xff]   ;;  %v2561_v62 = vld [vmem:[#allocation4 + $0x50] sm:$0xff]  }
  0x4e   : > { %2233 = vmatpush3.bf16.msra.mxu1 %v2537_v7  ;;  %v2562_v63 = vld [vmem:[#allocation4 + $0x58] sm:$0xff]   ;;  %v2563_v0 = vld [vmem:[#allocation4 + $0x60] sm:$0xff]   ;;  %v2564_v1 = vld [vmem:[#allocation4 + $0x68] sm:$0xff]  }
  0x4f   : > { %2234 = vmatprep.subr.bf16.mxu1 %v2538_v9  ;;  %v1998_v2 = vld [vmem:[%s3025_s6] ss:$0 sm:$0xff] }
  0x50   : > { %2223 = vmatpush3.bf16.msra.mxu0 %v2532_v6 }
  0x51   : > { %2248 = vmatprep.subr.bf16.mxu0 %v2543_v14 }
  0x52   : > { %2235 = vmatpush3.bf16.msra.mxu1 %v2538_v9 }
  0x53   : > { %2225 = vmatmul.mubr.msk.bf16.vlgmr.msra.gmra.mrb[0].mxu0 %vm420_vm0, %v2534_v8  ;;  %2236 = vmatprep.subr.bf16.mxu1 %v2539_v10 }
  0x54   : > { %2249 = vmatpush3.bf16.msra.mxu0 %v2543_v14 }
  0x55   : > { %2250 = vmatprep.subr.bf16.mxu0 %v2544_v15 }
  0x56   : > { %2237 = vmatpush3.bf16.msra.mxu1 %v2539_v10 }
  0x57   : > { %2238 = vmatprep.subr.bf16.mxu1 %v2540_v11 }
  0x58   : > { %2251 = vmatpush3.bf16.msra.mxu0 %v2544_v15 }
  0x59   : > { %2252 = vmatprep.subr.bf16.mxu0 %v2545_v16 }
  0x5a   : > { %2239 = vmatpush3.bf16.msra.mxu1 %v2540_v11 }
  0x5b   : > { %2240 = vmatprep.subr.bf16.mxu1 %v2541_v12 }
  0x5c   : > { %2253 = vmatpush3.bf16.msra.mxu0 %v2545_v16 }
  0x5d   : > { %2254 = vmatprep.subr.bf16.mxu0 %v2546_v17 }
  0x5e   : > { %2241 = vmatpush3.bf16.msra.mxu1 %v2541_v12 }
  0x5f   : > { %2242 = vmatprep.subr.bf16.mxu1 %v2542_v13 }
  0x60   : > { %2255 = vmatpush3.bf16.msra.mxu0 %v2546_v17 }
  0x61   : > { %2256 = vmatprep.subr.bf16.mxu0 %v2547_v18 }
  0x62   : > { %2243 = vmatpush3.bf16.msra.mxu1 %v2542_v13 }
  0x63   : > { %2268 = vmatprep.subr.bf16.mxu1 %v2551_v37 }
  0x64   : > { %2257 = vmatpush3.bf16.msra.mxu0 %v2547_v18 }
  0x65   : > { %2258 = vmatprep.subr.bf16.mxu0 %v2548_v19 }
  0x68   : > { %2259 = vmatpush3.bf16.msra.mxu0 %v2548_v19 }
  0x69   : > { %2260 = vmatprep.subr.bf16.mxu0 %v2549_v35 }
  0x6c   : > { %2261 = vmatpush3.bf16.msra.mxu0 %v2549_v35 }
  0x6d   : > { %2262 = vmatprep.subr.bf16.mxu0 %v2550_v36 }
  0x70   : > { %2263 = vmatpush3.bf16.msra.mxu0 %v2550_v36 }
  0x71   : > { %2288 = vmatprep.subr.bf16.mxu0 %v2559_v60 }
 0x126   : > { %v2226_v21 = vpop.f32.mrb[0].mxu0 }
 0x127   : > { %v461_v22 = vpop.f32.mrb[1].mxu0  ;;  %v2853_v25 = vadd.f32 %v2226_v21, %v1980_v20  ;;  %v2565_v21 = vld [vmem:[#allocation4 + $0x70] sm:$0xff]  }
 0x128   : > { %v2851_v23 = vadd.f32 %v1980_v20, %v461_v22  ;;  %v2227_v24 = vpop.f32.mrb[2].mxu0  ;;  %v2566_v22 = vld [vmem:[#allocation4 + $0x78] sm:$0xff]  }
 0x129   : > { %v2855_v26 = vadd.f32 %v2227_v24, %v1980_v20  ;;  %v464_v27 = vpop.f32.mrb[3].mxu0  ;;  %v478_v32 = vmax.f32 %v2853_v25, 0.0  ;;  %v2568_v24 = vld [vmem:[#allocation2 + $0x88] sm:$0xff]  }
 0x12a   : > { %v2857_v28 = vadd.f32 %v1980_v20, %v464_v27  ;;  %v476_v30 = vmax.f32 %v2851_v23, 0.0  ;;  %v2571_v27 = vld [vmem:[#allocation2 + $0xa0] sm:$0xff]  }
 0x12b   : > { %v479_v29 = vmax.f32 %v2855_v26, 0.0 }
 0x12c   : > { %v477_v31 = vmax.f32 %v2857_v28, 0.0 }
 0x12d   : > { %v481_v34 = vpack.c.bf16 %v479_v29, %v478_v32 }
 0x12e   : > { %v480_v33 = vpack.c.bf16 %v477_v31, %v476_v30 }
 0x130   : > { %2244 = vmatprep.mubr.bf16.mxu1 %v480_v33 }
 0x131   : > { %2245 = vmatmul.mubr.bf16.vlgmr.msra.gmra.mrb[0].mxu1 %v481_v34 }
 0x132   : > { %2269 = vmatpush3.bf16.msra.mxu1 %v2551_v37 }
 0x133   : > { %2270 = vmatprep.subr.bf16.mxu1 %v2552_v38 }
 0x136   : > { %2271 = vmatpush3.bf16.msra.mxu1 %v2552_v38 }
 0x137   : > { %2272 = vmatprep.subr.bf16.mxu1 %v2553_v39 }
 0x13a   : > { %2273 = vmatpush3.bf16.msra.mxu1 %v2553_v39 }
 0x13b   : > { %2274 = vmatprep.subr.bf16.mxu1 %v2554_v40 }
 0x13e   : > { %2275 = vmatpush3.bf16.msra.mxu1 %v2554_v40 }
 0x13f   : > { %2276 = vmatprep.subr.bf16.mxu1 %v2555_v41 }
 0x142   : > { %2277 = vmatpush3.bf16.msra.mxu1 %v2555_v41 }
 0x143   : > { %2278 = vmatprep.subr.bf16.mxu1 %v2556_v57 }
 0x146   : > { %2279 = vmatpush3.bf16.msra.mxu1 %v2556_v57 }
 0x147   : > { %2280 = vmatprep.subr.bf16.mxu1 %v2557_v58 }
 0x14a   : > { %2281 = vmatpush3.bf16.msra.mxu1 %v2557_v58 }
 0x14b   : > { %2282 = vmatprep.subr.bf16.mxu1 %v2558_v59 }
 0x14e   : > { %2283 = vmatpush3.bf16.msra.mxu1 %v2558_v59 }
 0x204   : > { %v2246_v43 = vpop.f32.mrb[0].mxu1 }
 0x205   : > { %v596_v44 = vadd.f32 %v2246_v43, %v1989_v42  ;;  %v587_v45 = vpop.f32.mrb[1].mxu1  ;;  %v2572_v43 = vld [vmem:[#allocation2 + $0xa8] sm:$0xff]  }
 0x206   : > { %v588_v46 = vadd.f32 %v1989_v42, %v587_v45  ;;  %v2247_v47 = vpop.f32.mrb[2].mxu1  ;;  %v2574_v45 = vld [vmem:[#allocation2 + $0xb8] sm:$0xff]  }
 0x207   : > { %v599_v48 = vadd.f32 %v2247_v47, %v1989_v42  ;;  %v590_v49 = vpop.f32.mrb[3].mxu1  ;;  %v604_v51 = vmax.f32 %v596_v44, 0.0  ;;  %v2573_v44 = vld [vmem:[#allocation2 + $0xb0] sm:$0xff]   ;;  %v2576_v47 = vld [vmem:[#allocation4 + $0x88] sm:$0xff]  }
 0x208   : > { %v591_v50 = vadd.f32 %v1989_v42, %v590_v49  ;;  %v602_v53 = vmax.f32 %v588_v46, 0.0  ;;  %v2575_v46 = vld [vmem:[#allocation4 + $0x80] sm:$0xff]   ;;  %v2578_v49 = vld [vmem:[#allocation4 + $0x98] sm:$0xff]  }
 0x209   : > { %v605_v52 = vmax.f32 %v599_v48, 0.0  ;;  %v2577_v48 = vld [vmem:[#allocation4 + $0x90] sm:$0xff]  }
 0x20a   : > { %v603_v54 = vmax.f32 %v591_v50, 0.0  ;;  %v2579_v50 = vld [vmem:[#allocation4 + $0xa0] sm:$0xff]  }
 0x20b   : > { %v607_v55 = vpack.c.bf16 %v605_v52, %v604_v51  ;;  %v2580_v51 = vld [vmem:[#allocation4 + $0xa8] sm:$0xff]   ;;  %v2018_v52 = vld [vmem:[%s3025_s6 + $0x1] ss:$0 sm:$0xff] }
 0x20c   : > { %v606_v56 = vpack.c.bf16 %v603_v54, %v602_v53 }
 0x20e   : > { %2264 = vmatprep.mubr.bf16.mxu0 %v606_v56 }
 0x20f   : > { %2265 = vmatmul.mubr.bf16.vlgmr.msra.gmra.mrb[4].mxu0 %v607_v55 }
 0x210   : > { %2289 = vmatpush3.bf16.msra.mxu0 %v2559_v60 }
 0x211   : > { %2290 = vmatprep.subr.bf16.mxu0 %v2560_v61 }
 0x214   : > { %2291 = vmatpush3.bf16.msra.mxu0 %v2560_v61 }
 0x215   : > { %2292 = vmatprep.subr.bf16.mxu0 %v2561_v62 }
 0x218   : > { %2293 = vmatpush3.bf16.msra.mxu0 %v2561_v62 }
 0x219   : > { %2294 = vmatprep.subr.bf16.mxu0 %v2562_v63 }
 0x21c   : > { %2295 = vmatpush3.bf16.msra.mxu0 %v2562_v63 }
 0x21d   : > { %2296 = vmatprep.subr.bf16.mxu0 %v2563_v0 }
 0x220   : > { %2297 = vmatpush3.bf16.msra.mxu0 %v2563_v0 }
 0x221   : > { %2298 = vmatprep.subr.bf16.mxu0 %v2564_v1 }
 0x224   : > { %2299 = vmatpush3.bf16.msra.mxu0 %v2564_v1 }
 0x225   : > { %2300 = vmatprep.subr.bf16.mxu0 %v2565_v21 }
 0x228   : > { %2301 = vmatpush3.bf16.msra.mxu0 %v2565_v21 }
 0x229   : > { %2302 = vmatprep.subr.bf16.mxu0 %v2566_v22 }
 0x22c   : > { %2303 = vmatpush3.bf16.msra.mxu0 %v2566_v22 }
 0x22d   : > { %2328 = vmatprep.subr.bf16.mxu0 %v2575_v46 }
 0x2e2   : > { %v2266_v3 = vpop.f32.mrb[4].mxu0 }
 0x2e3   : > { %v722_v4 = vadd.f32 %v2266_v3, %v1998_v2  ;;  %v713_v5 = vpop.f32.mrb[5].mxu0 }
 0x2e4   : > { %v714_v6 = vadd.f32 %v1998_v2, %v713_v5  ;;  %v2267_v7 = vpop.f32.mrb[6].mxu0 }
 0x2e5   : > { %v725_v8 = vadd.f32 %v2267_v7, %v1998_v2  ;;  %v716_v9 = vpop.f32.mrb[7].mxu0  ;;  %v2873_v12 = vadd.f32 %v722_v4, %v2853_v25  ;;  %v2569_v25 = vld [vmem:[#allocation2 + $0x90] sm:$0xff]  }
 0x2e6   : > { %v2870_v10 = vadd.f32 %v714_v6, %v2851_v23  ;;  %v717_v11 = vadd.f32 %v1998_v2, %v716_v9  ;;  %v2567_v23 = vld [vmem:[#allocation2 + $0x80] sm:$0xff]   ;;  %v2581_v7 = vld [vmem:[#allocation4 + $0xb0] sm:$0xff]  }
 0x2e7   : > { %v2876_v13 = vadd.f32 %v725_v8, %v2855_v26  ;;  %v734_v18 = vmax.f32 %v2873_v12, 0.0  ;;  %2308 = vmatprep.subr.bf16.mxu1 %v2567_v23  ;;  %v2570_v26 = vld [vmem:[#allocation2 + $0x98] sm:$0xff]   ;;  %v2583_v9 = vld [vmem:[#allocation2 + $0xc0] sm:$0xff]  }
 0x2e8   : > { %v2879_v14 = vadd.f32 %v717_v11, %v2857_v28  ;;  %v732_v16 = vmax.f32 %v2870_v10, 0.0  ;;  %v2008_v28 = vld [vmem:[%s3023_s4 + $0x1] ss:$0 sm:$0xff]  ;;  %v2582_v8 = vld [vmem:[#allocation4 + $0xb8] sm:$0xff]   ;;  %v2585_v11 = vld [vmem:[#allocation2 + $0xd0] sm:$0xff]  }
 0x2e9   : > { %v735_v15 = vmax.f32 %v2876_v13, 0.0 }
 0x2ea   : > { %v733_v17 = vmax.f32 %v2879_v14, 0.0 }
 0x2eb   : > { %v737_v20 = vpack.c.bf16 %v735_v15, %v734_v18 }
 0x2ec   : > { %v736_v19 = vpack.c.bf16 %v733_v17, %v732_v16 }
 0x2ee   : > { %2284 = vmatprep.mubr.bf16.mxu1 %v736_v19 }
 0x2ef   : > { %2285 = vmatmul.mubr.bf16.vlgmr.msra.gmra.mrb[4].mxu1 %v737_v20 }
 0x2f0   : > { %2309 = vmatpush3.bf16.msra.mxu1 %v2567_v23 }
 0x2f1   : > { %2310 = vmatprep.subr.bf16.mxu1 %v2568_v24 }
 0x2f4   : > { %2311 = vmatpush3.bf16.msra.mxu1 %v2568_v24 }
 0x2f5   : > { %2312 = vmatprep.subr.bf16.mxu1 %v2569_v25 }
 0x2f8   : > { %2313 = vmatpush3.bf16.msra.mxu1 %v2569_v25 }
 0x2f9   : > { %2314 = vmatprep.subr.bf16.mxu1 %v2570_v26 }
 0x2fc   : > { %2315 = vmatpush3.bf16.msra.mxu1 %v2570_v26 }
 0x2fd   : > { %2316 = vmatprep.subr.bf16.mxu1 %v2571_v27 }
 0x300   : > { %2317 = vmatpush3.bf16.msra.mxu1 %v2571_v27 }
 0x301   : > { %2318 = vmatprep.subr.bf16.mxu1 %v2572_v43 }
 0x304   : > { %2319 = vmatpush3.bf16.msra.mxu1 %v2572_v43 }
 0x305   : > { %2320 = vmatprep.subr.bf16.mxu1 %v2573_v44 }
 0x308   : > { %2321 = vmatpush3.bf16.msra.mxu1 %v2573_v44 }
 0x309   : > { %2322 = vmatprep.subr.bf16.mxu1 %v2574_v45 }
 0x30c   : > { %2323 = vmatpush3.bf16.msra.mxu1 %v2574_v45 }
 0x30d   : > { %2348 = vmatprep.subr.bf16.mxu1 %v2583_v9 }
 0x3c2   : > { %v2286_v29 = vpop.f32.mrb[4].mxu1 }
 0x3c3   : > { %v854_v30 = vadd.f32 %v2286_v29, %v2008_v28  ;;  %v845_v31 = vpop.f32.mrb[5].mxu1  ;;  %v2588_v29 = vld [vmem:[#allocation2 + $0xe8] sm:$0xff]  }
 0x3c4   : > { %v846_v32 = vadd.f32 %v2008_v28, %v845_v31  ;;  %v2287_v33 = vpop.f32.mrb[6].mxu1  ;;  %v2590_v31 = vld [vmem:[#allocation2 + $0xf8] sm:$0xff]  }
 0x3c5   : > { %v857_v34 = vadd.f32 %v2287_v33, %v2008_v28  ;;  %v848_v35 = vpop.f32.mrb[7].mxu1  ;;  %v862_v37 = vmax.f32 %v854_v30, 0.0  ;;  %v2589_v30 = vld [vmem:[#allocation2 + $0xf0] sm:$0xff]   ;;  %v2592_v33 = vld [vmem:[#allocation4 + $0xc8] sm:$0xff]  }
 0x3c6   : > { %v849_v36 = vadd.f32 %v2008_v28, %v848_v35  ;;  %v860_v39 = vmax.f32 %v846_v32, 0.0  ;;  %v2591_v32 = vld [vmem:[#allocation4 + $0xc0] sm:$0xff]   ;;  %v2594_v35 = vld [vmem:[#allocation4 + $0xd8] sm:$0xff]  }
 0x3c7   : > { %v863_v38 = vmax.f32 %v857_v34, 0.0  ;;  %v2593_v34 = vld [vmem:[#allocation4 + $0xd0] sm:$0xff]  }
 0x3c8   : > { %v861_v40 = vmax.f32 %v849_v36, 0.0  ;;  %v2595_v36 = vld [vmem:[#allocation4 + $0xe0] sm:$0xff]  }
 0x3c9   : > { %v865_v41 = vpack.c.bf16 %v863_v38, %v862_v37  ;;  %v2596_v37 = vld [vmem:[#allocation4 + $0xe8] sm:$0xff]   ;;  %v2038_v38 = vld [vmem:[%s3025_s6 + $0x2] ss:$0 sm:$0xff] }
 0x3ca   : > { %v864_v42 = vpack.c.bf16 %v861_v40, %v860_v39 }
 0x3cc   : > { %2304 = vmatprep.mubr.bf16.mxu0 %v864_v42 }
 0x3cd   : > { %2305 = vmatmul.mubr.bf16.vlgmr.msra.gmra.mrb[8].mxu0 %v865_v41 }
 0x3ce   : > { %2329 = vmatpush3.bf16.msra.mxu0 %v2575_v46 }
 0x3cf   : > { %2330 = vmatprep.subr.bf16.mxu0 %v2576_v47 }
 0x3d2   : > { %2331 = vmatpush3.bf16.msra.mxu0 %v2576_v47 }
 0x3d3   : > { %2332 = vmatprep.subr.bf16.mxu0 %v2577_v48 }
 0x3d6   : > { %2333 = vmatpush3.bf16.msra.mxu0 %v2577_v48 }
 0x3d7   : > { %2334 = vmatprep.subr.bf16.mxu0 %v2578_v49 }
 0x3da   : > { %2335 = vmatpush3.bf16.msra.mxu0 %v2578_v49 }
 0x3db   : > { %2336 = vmatprep.subr.bf16.mxu0 %v2579_v50 }
 0x3de   : > { %2337 = vmatpush3.bf16.msra.mxu0 %v2579_v50 }
 0x3df   : > { %2338 = vmatprep.subr.bf16.mxu0 %v2580_v51 }
 0x3e2   : > { %2339 = vmatpush3.bf16.msra.mxu0 %v2580_v51 }
 0x3e3   : > { %2340 = vmatprep.subr.bf16.mxu0 %v2581_v7 }
 0x3e6   : > { %2341 = vmatpush3.bf16.msra.mxu0 %v2581_v7 }
 0x3e7   : > { %2342 = vmatprep.subr.bf16.mxu0 %v2582_v8 }
 0x3ea   : > { %2343 = vmatpush3.bf16.msra.mxu0 %v2582_v8 }
 0x3eb   : > { %2368 = vmatprep.subr.bf16.mxu0 %v2591_v32 }
 0x4a0   : > { %v2306_v53 = vpop.f32.mrb[8].mxu0 }
 0x4a1   : > { %v982_v54 = vadd.f32 %v2306_v53, %v2018_v52  ;;  %v973_v55 = vpop.f32.mrb[9].mxu0 }
 0x4a2   : > { %v974_v56 = vadd.f32 %v2018_v52, %v973_v55  ;;  %v2307_v57 = vpop.f32.mrb[10].mxu0 }
 0x4a3   : > { %v985_v58 = vadd.f32 %v2307_v57, %v2018_v52  ;;  %v976_v59 = vpop.f32.mrb[11].mxu0  ;;  %v2895_v62 = vadd.f32 %v982_v54, %v2873_v12  ;;  %v2586_v12 = vld [vmem:[#allocation2 + $0xd8] sm:$0xff]   ;;  %v2597_v57 = vld [vmem:[#allocation4 + $0xf0] sm:$0xff]  }
 0x4a4   : > { %v2892_v60 = vadd.f32 %v974_v56, %v2870_v10  ;;  %v977_v61 = vadd.f32 %v2018_v52, %v976_v59  ;;  %v2584_v10 = vld [vmem:[#allocation2 + $0xc8] sm:$0xff]   ;;  %v2599_v59 = vld [vmem:[#allocation2 + $0x100] sm:$0xff]  }
 0x4a5   : > { %v2898_v63 = vadd.f32 %v985_v58, %v2876_v13  ;;  %v994_v4 = vmax.f32 %v2895_v62, 0.0  ;;  %v2587_v13 = vld [vmem:[#allocation2 + $0xe0] sm:$0xff]   ;;  %v2598_v58 = vld [vmem:[#allocation4 + $0xf8] sm:$0xff]  }
 0x4a6   : > { %v2901_v0 = vadd.f32 %v977_v61, %v2879_v14  ;;  %v992_v2 = vmax.f32 %v2892_v60, 0.0  ;;  %v2028_v14 = vld [vmem:[%s3023_s4 + $0x2] ss:$0 sm:$0xff]  ;;  %v2601_v61 = vld [vmem:[#allocation2 + $0x110] sm:$0xff]  }
 0x4a7   : > { %v995_v1 = vmax.f32 %v2898_v63, 0.0 }
 0x4a8   : > { %v993_v3 = vmax.f32 %v2901_v0, 0.0 }
 0x4a9   : > { %v997_v6 = vpack.c.bf16 %v995_v1, %v994_v4 }
 0x4aa   : > { %v996_v5 = vpack.c.bf16 %v993_v3, %v992_v2 }
 0x4ac   : > { %2324 = vmatprep.mubr.bf16.mxu1 %v996_v5 }
 0x4ad   : > { %2325 = vmatmul.mubr.bf16.vlgmr.msra.gmra.mrb[8].mxu1 %v997_v6 }
 0x4ae   : > { %2349 = vmatpush3.bf16.msra.mxu1 %v2583_v9 }
 0x4af   : > { %2350 = vmatprep.subr.bf16.mxu1 %v2584_v10 }
 0x4b2   : > { %2351 = vmatpush3.bf16.msra.mxu1 %v2584_v10 }
 0x4b3   : > { %2352 = vmatprep.subr.bf16.mxu1 %v2585_v11 }
 0x4b6   : > { %2353 = vmatpush3.bf16.msra.mxu1 %v2585_v11 }
 0x4b7   : > { %2354 = vmatprep.subr.bf16.mxu1 %v2586_v12 }
 0x4ba   : > { %2355 = vmatpush3.bf16.msra.mxu1 %v2586_v12 }
 0x4bb   : > { %2356 = vmatprep.subr.bf16.mxu1 %v2587_v13 }
 0x4be   : > { %2357 = vmatpush3.bf16.msra.mxu1 %v2587_v13 }
 0x4bf   : > { %2358 = vmatprep.subr.bf16.mxu1 %v2588_v29 }
 0x4c2   : > { %2359 = vmatpush3.bf16.msra.mxu1 %v2588_v29 }
 0x4c3   : > { %2360 = vmatprep.subr.bf16.mxu1 %v2589_v30 }
 0x4c6   : > { %2361 = vmatpush3.bf16.msra.mxu1 %v2589_v30 }
 0x4c7   : > { %2362 = vmatprep.subr.bf16.mxu1 %v2590_v31 }
 0x4ca   : > { %2363 = vmatpush3.bf16.msra.mxu1 %v2590_v31 }
 0x4cb   : > { %2388 = vmatprep.subr.bf16.mxu1 %v2599_v59 }
 0x580   : > { %v2326_v15 = vpop.f32.mrb[8].mxu1 }
 0x581   : > { %v1114_v16 = vadd.f32 %v2326_v15, %v2028_v14  ;;  %v1105_v17 = vpop.f32.mrb[9].mxu1  ;;  %v2604_v15 = vld [vmem:[#allocation2 + $0x128] sm:$0xff]  }
 0x582   : > { %v1106_v18 = vadd.f32 %v2028_v14, %v1105_v17  ;;  %v2327_v19 = vpop.f32.mrb[10].mxu1  ;;  %v2606_v17 = vld [vmem:[#allocation2 + $0x138] sm:$0xff]  }
 0x583   : > { %v1117_v20 = vadd.f32 %v2327_v19, %v2028_v14  ;;  %v1108_v21 = vpop.f32.mrb[11].mxu1  ;;  %v1122_v23 = vmax.f32 %v1114_v16, 0.0  ;;  %v2605_v16 = vld [vmem:[#allocation2 + $0x130] sm:$0xff]   ;;  %v2608_v19 = vld [vmem:[#allocation4 + $0x108] sm:$0xff]  }
 0x584   : > { %v1109_v22 = vadd.f32 %v2028_v14, %v1108_v21  ;;  %v1120_v25 = vmax.f32 %v1106_v18, 0.0  ;;  %v2607_v18 = vld [vmem:[#allocation4 + $0x100] sm:$0xff]   ;;  %v2610_v21 = vld [vmem:[#allocation4 + $0x118] sm:$0xff]  }
 0x585   : > { %v1123_v24 = vmax.f32 %v1117_v20, 0.0  ;;  %v2609_v20 = vld [vmem:[#allocation4 + $0x110] sm:$0xff]  }
 0x586   : > { %v1121_v26 = vmax.f32 %v1109_v22, 0.0  ;;  %v2611_v22 = vld [vmem:[#allocation4 + $0x120] sm:$0xff]  }
 0x587   : > { %v1125_v27 = vpack.c.bf16 %v1123_v24, %v1122_v23  ;;  %v2612_v23 = vld [vmem:[#allocation4 + $0x128] sm:$0xff]   ;;  %v2058_v24 = vld [vmem:[%s3025_s6 + $0x3] ss:$0 sm:$0xff] }
 0x588   : > { %v1124_v28 = vpack.c.bf16 %v1121_v26, %v1120_v25 }
 0x58a   : > { %2344 = vmatprep.mubr.bf16.mxu0 %v1124_v28 }
 0x58b   : > { %2345 = vmatmul.mubr.bf16.vlgmr.msra.gmra.mrb[12].mxu0 %v1125_v27 }
 0x58c   : > { %2369 = vmatpush3.bf16.msra.mxu0 %v2591_v32 }
 0x58d   : > { %2370 = vmatprep.subr.bf16.mxu0 %v2592_v33 }
 0x590   : > { %2371 = vmatpush3.bf16.msra.mxu0 %v2592_v33 }
 0x591   : > { %2372 = vmatprep.subr.bf16.mxu0 %v2593_v34 }
 0x594   : > { %2373 = vmatpush3.bf16.msra.mxu0 %v2593_v34 }
 0x595   : > { %2374 = vmatprep.subr.bf16.mxu0 %v2594_v35 }
 0x598   : > { %2375 = vmatpush3.bf16.msra.mxu0 %v2594_v35 }
 0x599   : > { %2376 = vmatprep.subr.bf16.mxu0 %v2595_v36 }
 0x59c   : > { %2377 = vmatpush3.bf16.msra.mxu0 %v2595_v36 }
 0x59d   : > { %2378 = vmatprep.subr.bf16.mxu0 %v2596_v37 }
 0x5a0   : > { %2379 = vmatpush3.bf16.msra.mxu0 %v2596_v37 }
 0x5a1   : > { %2380 = vmatprep.subr.bf16.mxu0 %v2597_v57 }
 0x5a4   : > { %2381 = vmatpush3.bf16.msra.mxu0 %v2597_v57  ;;  %v1784_v57 = vld [vmem:[%s3026_s7 + $0x40] sm:$0xff] }
 0x5a5   : > { %2382 = vmatprep.subr.bf16.mxu0 %v2598_v58 }
 0x5a8   : > { %2383 = vmatpush3.bf16.msra.mxu0 %v2598_v58  ;;  %v1785_v58 = vld [vmem:[%s3026_s7 + $0x48] sm:$0xff] }
 0x5a9   : > { %2408 = vmatprep.subr.bf16.mxu0 %v2607_v18 }
 0x65e   : > { %v2346_v39 = vpop.f32.mrb[12].mxu0 }
 0x65f   : > { %v1242_v40 = vadd.f32 %v2346_v39, %v2038_v38  ;;  %v1233_v41 = vpop.f32.mrb[13].mxu0 }
 0x660   : > { %v1234_v42 = vadd.f32 %v2038_v38, %v1233_v41  ;;  %v2347_v43 = vpop.f32.mrb[14].mxu0 }
 0x661   : > { %v1245_v44 = vadd.f32 %v2347_v43, %v2038_v38  ;;  %v1236_v45 = vpop.f32.mrb[15].mxu0  ;;  %v2917_v48 = vadd.f32 %v1242_v40, %v2895_v62  ;;  %v2602_v62 = vld [vmem:[#allocation2 + $0x118] sm:$0xff]   ;;  %v2613_v43 = vld [vmem:[#allocation4 + $0x130] sm:$0xff]  }
 0x662   : > { %v2914_v46 = vadd.f32 %v1234_v42, %v2892_v60  ;;  %v1237_v47 = vadd.f32 %v2038_v38, %v1236_v45  ;;  %v2600_v60 = vld [vmem:[#allocation2 + $0x108] sm:$0xff]   ;;  %v1776_v45 = vld [vmem:[%s3026_s7] sm:$0xff] }
 0x663   : > { %v2920_v49 = vadd.f32 %v1245_v44, %v2898_v63  ;;  %v1254_v54 = vmax.f32 %v2917_v48, 0.0  ;;  %v2603_v63 = vld [vmem:[#allocation2 + $0x120] sm:$0xff]   ;;  %v2614_v44 = vld [vmem:[#allocation4 + $0x138] sm:$0xff]  }
 0x664   : > { %v2923_v50 = vadd.f32 %v1237_v47, %v2901_v0  ;;  %v1252_v52 = vmax.f32 %v2914_v46, 0.0  ;;  %v2048_v0 = vld [vmem:[%s3023_s4 + $0x3] ss:$0 sm:$0xff]  ;;  %v1778_v47 = vld [vmem:[%s3026_s7 + $0x10] sm:$0xff] }
 0x665   : > { %v1255_v51 = vmax.f32 %v2920_v49, 0.0 }
 0x666   : > { %v1253_v53 = vmax.f32 %v2923_v50, 0.0 }
 0x667   : > { %v1257_v56 = vpack.c.bf16 %v1255_v51, %v1254_v54  ;;  %v1780_v51 = vld [vmem:[%s3026_s7 + $0x20] sm:$0xff]  ;;  %v1782_v54 = vld [vmem:[%s3026_s7 + $0x30] sm:$0xff] }
 0x668   : > { %v1256_v55 = vpack.c.bf16 %v1253_v53, %v1252_v52  ;;  %v1781_v52 = vld [vmem:[%s3026_s7 + $0x28] sm:$0xff] }
 0x669   : > { %v2474_v53 = vpack.c.bf16 %v1781_v52, %v1780_v51 }
 0x66a   : > { %2364 = vmatprep.mubr.bf16.mxu1 %v1256_v55  ;;  %v1783_v55 = vld [vmem:[%s3026_s7 + $0x38] sm:$0xff] }
 0x66b   : > { %2365 = vmatmul.mubr.bf16.vlgmr.msra.gmra.mrb[12].mxu1 %v1257_v56  ;;  %v2478_v56 = vpack.c.bf16 %v1783_v55, %v1782_v54 }
 0x66c   : > { %2389 = vmatpush3.bf16.msra.mxu1 %v2599_v59  ;;  %v2482_v59 = vpack.c.bf16 %v1785_v58, %v1784_v57 }
 0x66d   : > { %2390 = vmatprep.subr.bf16.mxu1 %v2600_v60 }
 0x670   : > { %2391 = vmatpush3.bf16.msra.mxu1 %v2600_v60  ;;  %v1786_v60 = vld [vmem:[%s3026_s7 + $0x50] sm:$0xff] }
 0x671   : > { %2392 = vmatprep.subr.bf16.mxu1 %v2601_v61 }
 0x674   : > { %2393 = vmatpush3.bf16.msra.mxu1 %v2601_v61  ;;  %v1787_v61 = vld [vmem:[%s3026_s7 + $0x58] sm:$0xff] }
 0x675   : > { %2394 = vmatprep.subr.bf16.mxu1 %v2602_v62 }
 0x678   : > { %2395 = vmatpush3.bf16.msra.mxu1 %v2602_v62  ;;  %v2486_v62 = vpack.c.bf16 %v1787_v61, %v1786_v60 }
 0x679   : > { %2396 = vmatprep.subr.bf16.mxu1 %v2603_v63 }
 0x67c   : > { %2397 = vmatpush3.bf16.msra.mxu1 %v2603_v63  ;;  %v2068_v63 = vld [vmem:[%s3023_s4 + $0x4] ss:$0 sm:$0xff] }
 0x67d   : > { %2398 = vmatprep.subr.bf16.mxu1 %v2604_v15 }
 0x680   : > { %2399 = vmatpush3.bf16.msra.mxu1 %v2604_v15  ;;  %v1789_v15 = vld [vmem:[%s3026_s7 + $0x68] sm:$0xff] }
 0x681   : > { %2400 = vmatprep.subr.bf16.mxu1 %v2605_v16 }
 0x684   : > { %2401 = vmatpush3.bf16.msra.mxu1 %v2605_v16 }
 0x685   : > { %2402 = vmatprep.subr.bf16.mxu1 %v2606_v17 }
 0x688   : > { %2403 = vmatpush3.bf16.msra.mxu1 %v2606_v17  ;;  %v1790_v17 = vld [vmem:[%s3026_s7 + $0x70] sm:$0xff] }
 0x73e   : > { %v2366_v1 = vpop.f32.mrb[12].mxu1 }
 0x73f   : > { %v1374_v2 = vadd.f32 %v2366_v1, %v2048_v0  ;;  %v1365_v3 = vpop.f32.mrb[13].mxu1 }
 0x740   : > { %v1366_v4 = vadd.f32 %v2048_v0, %v1365_v3  ;;  %v2367_v5 = vpop.f32.mrb[14].mxu1 }
 0x741   : > { %v1377_v6 = vadd.f32 %v2367_v5, %v2048_v0  ;;  %v1368_v7 = vpop.f32.mrb[15].mxu1  ;;  %v1382_v9 = vmax.f32 %v1374_v2, 0.0 }
 0x742   : > { %v1369_v8 = vadd.f32 %v2048_v0, %v1368_v7  ;;  %v1380_v11 = vmax.f32 %v1366_v4, 0.0 }
 0x743   : > { %v1383_v10 = vmax.f32 %v1377_v6, 0.0 }
 0x744   : > { %v1381_v12 = vmax.f32 %v1369_v8, 0.0 }
 0x745   : > { %v1385_v13 = vpack.c.bf16 %v1383_v10, %v1382_v9 }
 0x746   : > { %v1384_v14 = vpack.c.bf16 %v1381_v12, %v1380_v11 }
 0x748   : > { %2384 = vmatprep.mubr.bf16.mxu0 %v1384_v14  ;;  %v1788_v14 = vld [vmem:[%s3026_s7 + $0x60] sm:$0xff] }
 0x749   : > { %2385 = vmatmul.mubr.bf16.vlgmr.msra.gmra.mrb[16].mxu0 %v1385_v13  ;;  %v2490_v16 = vpack.c.bf16 %v1789_v15, %v1788_v14 }
 0x74a   : > { %2409 = vmatpush3.bf16.msra.mxu0 %v2607_v18  ;;  %v1791_v18 = vld [vmem:[%s3026_s7 + $0x78] sm:$0xff] }
 0x74b   : > { %2410 = vmatprep.subr.bf16.mxu0 %v2608_v19 }
 0x74e   : > { %2411 = vmatpush3.bf16.msra.mxu0 %v2608_v19  ;;  %v2494_v19 = vpack.c.bf16 %v1791_v18, %v1790_v17 }
 0x74f   : > { %2412 = vmatprep.subr.bf16.mxu0 %v2609_v20 }
 0x752   : > { %2413 = vmatpush3.bf16.msra.mxu0 %v2609_v20  ;;  %v2078_v20 = vld [vmem:[%s3025_s6 + $0x4] ss:$0 sm:$0xff] }
 0x753   : > { %2414 = vmatprep.subr.bf16.mxu0 %v2610_v21 }
 0x756   : > { %2415 = vmatpush3.bf16.msra.mxu0 %v2610_v21 }
 0x757   : > { %2416 = vmatprep.subr.bf16.mxu0 %v2611_v22 }
 0x75a   : > { %2417 = vmatpush3.bf16.msra.mxu0 %v2611_v22 }
 0x75b   : > { %2418 = vmatprep.subr.bf16.mxu0 %v2612_v23 }
 0x75e   : > { %2419 = vmatpush3.bf16.msra.mxu0 %v2612_v23 }
 0x75f   : > { %2420 = vmatprep.subr.bf16.mxu0 %v2613_v43 }
 0x762   : > { %2421 = vmatpush3.bf16.msra.mxu0 %v2613_v43 }
 0x763   : > { %2422 = vmatprep.subr.bf16.mxu0 %v2614_v44 }
 0x766   : > { %2423 = vmatpush3.bf16.msra.mxu0 %v2614_v44 }
 0x81c   : > { %v2386_v25 = vpop.f32.mrb[16].mxu0 }
 0x81d   : > { %v1502_v26 = vadd.f32 %v2386_v25, %v2058_v24  ;;  %v1493_v27 = vpop.f32.mrb[17].mxu0 }
 0x81e   : > { %v1494_v28 = vadd.f32 %v2058_v24, %v1493_v27  ;;  %v2387_v29 = vpop.f32.mrb[18].mxu0 }
 0x81f   : > { %v1505_v30 = vadd.f32 %v2387_v29, %v2058_v24  ;;  %v1496_v31 = vpop.f32.mrb[19].mxu0  ;;  %v2939_v34 = vadd.f32 %v1502_v26, %v2917_v48 }
 0x820   : > { %v2936_v32 = vadd.f32 %v1494_v28, %v2914_v46  ;;  %v1497_v33 = vadd.f32 %v2058_v24, %v1496_v31  ;;  %v1777_v46 = vld [vmem:[%s3026_s7 + $0x8] sm:$0xff] }
 0x821   : > { %v2942_v35 = vadd.f32 %v1505_v30, %v2920_v49  ;;  %v1514_v40 = vmax.f32 %v2939_v34, 0.0  ;;  %v2466_v48 = vpack.c.bf16 %v1777_v46, %v1776_v45  ;;  %v1779_v49 = vld [vmem:[%s3026_s7 + $0x18] sm:$0xff] }
 0x822   : > { %v2945_v36 = vadd.f32 %v1497_v33, %v2923_v50  ;;  %v1512_v38 = vmax.f32 %v2936_v32, 0.0  ;;  %v2470_v50 = vpack.c.bf16 %v1779_v49, %v1778_v47 }
 0x823   : > { %v1515_v37 = vmax.f32 %v2942_v35, 0.0  ;;  %2467 = vmatprep.subr.bf16.mxu1 %v2466_v48 }
 0x824   : > { %v1513_v39 = vmax.f32 %v2945_v36, 0.0 }
 0x825   : > { %v1517_v42 = vpack.c.bf16 %v1515_v37, %v1514_v40 }
 0x826   : > { %v1516_v41 = vpack.c.bf16 %v1513_v39, %v1512_v38 }
 0x828   : > { %2404 = vmatprep.mubr.bf16.mxu1 %v1516_v41 }
 0x829   : > { %2405 = vmatmul.mubr.bf16.vlgmr.msra.gmra.mrb[16].mxu1 %v1517_v42 }
 0x82a   : > { %2469 = vmatpush3.bf16.msra.mxu1 %v2466_v48 }
 0x82b   : > { %2471 = vmatprep.subr.bf16.mxu1 %v2470_v50 }
 0x82e   : > { %2473 = vmatpush3.bf16.msra.mxu1 %v2470_v50 }
 0x82f   : > { %2475 = vmatprep.subr.bf16.mxu1 %v2474_v53 }
 0x832   : > { %2477 = vmatpush3.bf16.msra.mxu1 %v2474_v53 }
 0x833   : > { %2479 = vmatprep.subr.bf16.mxu1 %v2478_v56 }
 0x836   : > { %2481 = vmatpush3.bf16.msra.mxu1 %v2478_v56 }
 0x837   : > { %2483 = vmatprep.subr.bf16.mxu1 %v2482_v59 }
 0x83a   : > { %2485 = vmatpush3.bf16.msra.mxu1 %v2482_v59 }
 0x83b   : > { %2487 = vmatprep.subr.bf16.mxu1 %v2486_v62 }
 0x83e   : > { %2489 = vmatpush3.bf16.msra.mxu1 %v2486_v62 }
 0x83f   : > { %2491 = vmatprep.subr.bf16.mxu1 %v2490_v16 }
 0x842   : > { %2493 = vmatpush3.bf16.msra.mxu1 %v2490_v16 }
 0x843   : > { %2495 = vmatprep.subr.bf16.mxu1 %v2494_v19 }
 0x846   : > { %2497 = vmatpush3.bf16.msra.mxu1 %v2494_v19 }
 0x8fc   : > { %v2406_v0 = vpop.f32.mrb[16].mxu1 }
 0x8fd   : > { %v1634_v1 = vadd.f32 %v2406_v0, %v2068_v63  ;;  %v1625_v2 = vpop.f32.mrb[17].mxu1 }
 0x8fe   : > { %v1626_v3 = vadd.f32 %v2068_v63, %v1625_v2  ;;  %v2407_v4 = vpop.f32.mrb[18].mxu1 }
 0x8ff   : > { %v1637_v5 = vadd.f32 %v2407_v4, %v2068_v63  ;;  %v1628_v6 = vpop.f32.mrb[19].mxu1  ;;  %v1642_v8 = vmax.f32 %v1634_v1, 0.0 }
 0x900   : > { %v1629_v7 = vadd.f32 %v2068_v63, %v1628_v6  ;;  %v1640_v10 = vmax.f32 %v1626_v3, 0.0 }
 0x901   : > { %v1643_v9 = vmax.f32 %v1637_v5, 0.0 }
 0x902   : > { %v1641_v11 = vmax.f32 %v1629_v7, 0.0 }
 0x903   : > { %v1645_v12 = vpack.c.bf16 %v1643_v9, %v1642_v8 }
 0x904   : > { %v1644_v13 = vpack.c.bf16 %v1641_v11, %v1640_v10 }
 0x906   : > { %2424 = vmatprep.mubr.bf16.mxu0 %v1644_v13 }
 0x907   : > { %2425 = vmatmul.mubr.bf16.vlgmr.msra.gmra.mrb[20].mxu0 %v1645_v12 }
 0x9da   : > { %v2426_v21 = vpop.f32.mrb[20].mxu0 }
 0x9db   : > { %v1762_v22 = vadd.f32 %v2426_v21, %v2078_v20  ;;  %v1753_v23 = vpop.f32.mrb[21].mxu0 }
 0x9dc   : > { %v1754_v24 = vadd.f32 %v2078_v20, %v1753_v23  ;;  %v2427_v25 = vpop.f32.mrb[22].mxu0 }
 0x9dd   : > { %v1756_v26 = vpop.f32.mrb[23].mxu0  ;;  %v1765_v28 = vadd.f32 %v2427_v25, %v2078_v20  ;;  %v1770_v30 = vadd.f32 %v1762_v22, %v2939_v34 }
 0x9de   : > { %v1768_v27 = vadd.f32 %v1754_v24, %v2936_v32  ;;  %v1757_v29 = vadd.f32 %v2078_v20, %v1756_v26  ;;  %v2087_v32 = vld [vmem:[%s3027_s8] ss:$0 sm:$0xff] }
 0x9df   : > { %v1771_v37 = vadd.f32 %v1765_v28, %v2942_v35  ;;  %v1774_v39 = vmax.f32 %v1770_v30, 0.0 }
 0x9e0   : > { %v1772_v31 = vmax.f32 %v1768_v27, 0.0  ;;  %v1769_v33 = vadd.f32 %v1757_v29, %v2945_v36 }
 0x9e1   : > { %v1775_v40 = vmax.f32 %v1771_v37, 0.0 }
 0x9e2   : > { %v1773_v38 = vmax.f32 %v1769_v33, 0.0  ;;  %2460 = vmatprep.mubr.f32.mxu1 %v1772_v31 }
 0x9e4   : > { %2461 = vmatmul.mubr.f32.vlgmr.msra.gmra.mrb[20].mxu1 %v1773_v38 }
 0x9e5   : > { %2463 = vmatprep.mubr.f32.mxu1 %v1774_v39 }
 0x9e8   : > { %2464 = vmatmul.mubr.f32.gmra.mrb[22].mxu1 %v1775_v40 }
 0xab7   : > { %v2462_v41 = vpop.f32.mrb[20].mxu1 }
 0xab8   : > { %v1865_v34 = vpop.f32.mrb[21].mxu1  ;;  %v1871_v36 = vadd.f32 %v2462_v41, %v2087_v32 }
 0xab9   : > { %v1866_v35 = vadd.f32 %v2087_v32, %v1865_v34 }
 0xaba   : > { %1886 = vst.msk [vmem:[%s364_s21 + $0x8] sm:$0xff] %vm1884_vm1, %v1871_v36 }
 0xabb   : > { %1885 = vst.msk [vmem:[%s364_s21] sm:$0xff] %vm1884_vm1, %v1866_v35  ;;  %v2465_v42 = vpop.f32.mrb[22].mxu1 }
 0xabc   : > { %v1875_v43 = vpop.f32.mrb[23].mxu1  ;;  %v1881_v45 = vadd.f32 %v2465_v42, %v2087_v32 }
 0xabd   : > { %v1876_v44 = vadd.f32 %v2087_v32, %v1875_v43 }
 0xabe   : > { %1888 = vst.msk [vmem:[%s364_s21 + $0x18] sm:$0xff] %vm1884_vm1, %v1881_v45 }
 0xabf   : > { %1887 = vst.msk [vmem:[%s364_s21 + $0x10] sm:$0xff] %vm1884_vm1, %v1876_v44 }
 0xac0 PF: > { %s21_s30 = sadd.s32 1, %s2685_s30  }
 0xac1   : > { %p18_p5 = scmp.ge.s32.totalorder %s21_s30, 4  }
 0xac3   :  { %20 = sbr.rel (!%p18_p5) target bundleno = 2 (0x2), region = 111 }
 0xaca   :  { %1911 = vsyncpa [#allocation3], 1 }
 0xacb   :  { %1913 = vsyncpa [#allocation3 + $0x1], 1 }
 0xacc   :  { %1914 = vsyncpa [#allocation5], 1 }

</bundles_post_ra>
